<compile_context>
chip_gen: v7x
topology: tpu7x:2x2x1
jax: 0.10.0
libtpu: 0.0.40
codegen_flags: <defaults>
</compile_context>

<pallas_src>
import functools

import jax
import jax.numpy as jnp
from jax.experimental import pallas as pl
from jax.experimental.pallas import tpu as pltpu


def _round_up(n, m):
    return ((n + m - 1) // m) * m


def _cdiv(a, b):
    return -(-a // b)


def _affine_kernel(x_ref, w_ref, b_ref, o_ref):
    """out = x @ W_fused + b_fused, natural (tile_b, 32) layout.

    The K=2 contraction is done with two broadcast FMAs on the VPU instead of
    pushing a <2%-utilized matmul through the MXU.
    """
    x = x_ref[...]                         # (tile_b, 2)
    w = w_ref[...]                         # (2, 32)   fused weight (VMEM-resident)
    b = b_ref[...]                         # (1, 32)   fused bias   (VMEM-resident)
    out = (x[:, 0:1] * w[0:1, :]           # (tile_b,1)*(1,32) -> (tile_b,32)
           + x[:, 1:2] * w[1:2, :]
           + b)
    o_ref[...] = out.astype(o_ref.dtype)


def make_testnet_forward(w1, b1, w2, b2, *,
                         tile_b_max=32768,
                         min_pallas_batch=4096,
                         out_dtype=None):
    """Build the _TestNet forward with fused parameters precomputed once.

    w1 : (2, 16)  float32   (transposed vs. torch's (16, 2))
    b1 : (1, 16)  float32
    w2 : (16, 32) float32   (transposed vs. torch's (32, 16))
    b2 : (1, 32)  float32
    Returns forward(x, force_pallas=False) mapping (B, 2) -> (B, 32).
    """
    # --- fuse the two affine layers ONCE (no per-call re-dispatch) ----------
    w_fused = jnp.asarray(w1 @ w2, dtype=jnp.float32)        # (2, 32)
    b_fused = jnp.asarray(b1 @ w2 + b2, dtype=jnp.float32)   # (1, 32)
    n_in, n_out = w_fused.shape

    # Keep tile a multiple of 128 (lane/sublane divisibility) and small enough
    # that 2x double-buffered (x + out) tiles fit the default scoped VMEM on
    # all of v5e / v6e / v7x (~8.9 MiB at 32768).
    tile_b_max_ = max(128, (tile_b_max // 128) * 128)

    def _pallas_forward(x, dtype):
        B = x.shape[0]
        # Bound padding waste: split B into n_tiles near-equal 128-multiples.
        n_tiles = max(1, _cdiv(B, tile_b_max_))
        tile = _round_up(_cdiv(B, n_tiles), 128)
        b_pad = n_tiles * tile

        x_pad = jnp.pad(x.astype(jnp.float32), ((0, b_pad - B), (0, 0)))

        out = pl.pallas_call(
            _affine_kernel,
            out_shape=jax.ShapeDtypeStruct((b_pad, n_out), dtype),
            grid_spec=pltpu.PrefetchScalarGridSpec(
                num_scalar_prefetch=0,
                grid=(n_tiles,),
                in_specs=[
                    pl.BlockSpec((tile, n_in), lambda i: (i, 0)),   # x tile
                    pl.BlockSpec((n_in, n_out), lambda i: (0, 0)),  # W_fused
                    pl.BlockSpec((1, n_out), lambda i: (0, 0)),     # b_fused
                ],
                out_specs=pl.BlockSpec((tile, n_out), lambda i: (i, 0)),
            ),
            compiler_params=pltpu.CompilerParams(
                dimension_semantics=("parallel",),
            ),
        )(x_pad, w_fused, b_fused)

        return out[:B]                                         # (B, 32)

    def forward(x, *, force_pallas=False):
        B = x.shape[0]
        dtype = out_dtype if out_dtype is not None else x.dtype
        # Small-batch fast path: a single fused XLA dot beats pallas_call
        # dispatch + padding plumbing for tiny inputs.
        if B < min_pallas_batch and not force_pallas:
            return (x @ w_fused + b_fused).astype(dtype)
        return _pallas_forward(x, dtype)

    return forward


def _init_params(key):
    # Deterministic synthetic parameters (PyTorch-style uniform init bounds).
    k1, k2, k3, k4 = jax.random.split(key, 4)
    bound1 = 1.0 / jnp.sqrt(2.0)    # Linear(2, 16)
    bound2 = 1.0 / jnp.sqrt(16.0)   # Linear(16, 32)
    # Stored as (in, out) so the math is x @ W directly.
    w1 = jax.random.uniform(k1, (2, 16), jnp.float32, -bound1, bound1)
    b1 = jax.random.uniform(k2, (1, 16), jnp.float32, -bound1, bound1)
    w2 = jax.random.uniform(k3, (16, 32), jnp.float32, -bound2, bound2)
    b2 = jax.random.uniform(k4, (1, 32), jnp.float32, -bound2, bound2)
    return w1, b1, w2, b2


if __name__ == "__main__":
    key = jax.random.PRNGKey(0)
    k_x, k_p = jax.random.split(key)
    w1, b1, w2, b2 = _init_params(k_p)

    forward = make_testnet_forward(w1, b1, w2, b2)

    # Input: batch=8, in_features=2 (Linear(2, 16) expects last dim 2).
    x = jax.random.normal(k_x, (8, 2), jnp.float32)

    # Reference: the original two-step torch computation in pure JAX.
    ref = (x @ w1 + b1) @ w2 + b2

    # Exercise the Pallas kernel path explicitly.
    out_pallas = jax.block_until_ready(forward(x, force_pallas=True))
    assert out_pallas.shape == (8, 32)
    assert jnp.allclose(out_pallas, ref, atol=1e-5, rtol=1e-5)

    # Also check the small-batch XLA fast path agrees.
    out_fast = jax.block_until_ready(forward(x))
    assert out_fast.shape == (8, 32)
    assert jnp.allclose(out_fast, ref, atol=1e-5, rtol=1e-5)

    print("KERNEL_OK")
</pallas_src>

<mosaic_0001>
module attributes {stable_mosaic.version = 11 : i64} {
  func.func @_affine_kernel(%arg0: i32, %arg1: memref<128x2xf32, #tpu.memory_space<vmem>>, %arg2: memref<2x32xf32, #tpu.memory_space<vmem>>, %arg3: memref<1x32xf32, #tpu.memory_space<vmem>>, %arg4: memref<128x32xf32, #tpu.memory_space<vmem>>) attributes {dimension_semantics = [#tpu.dimension_semantics<parallel>], iteration_bounds = array<i64: 1>, scalar_prefetch = 0 : i64, scratch_operands = 0 : i64, tpu.core_type = #tpu.core_type<tc>, window_params = [{transform_indices = @transform_0, window_bounds = array<i64: 128, 2>}, {pipeline_mode = #tpu.pipeline_mode<synchronous>, transform_indices = @transform_1, window_bounds = array<i64: 2, 32>}, {pipeline_mode = #tpu.pipeline_mode<synchronous>, transform_indices = @transform_2, window_bounds = array<i64: 1, 32>}, {transform_indices = @transform_3, window_bounds = array<i64: 128, 32>}]} {
    %c0 = arith.constant 0 : index
    %c0_0 = arith.constant 0 : index
    %0 = vector.load %arg1[%c0, %c0_0] : memref<128x2xf32, #tpu.memory_space<vmem>>, vector<128x2xf32>
    %c0_1 = arith.constant 0 : index
    %c0_2 = arith.constant 0 : index
    %1 = vector.load %arg2[%c0_1, %c0_2] : memref<2x32xf32, #tpu.memory_space<vmem>>, vector<2x32xf32>
    %c0_3 = arith.constant 0 : index
    %c0_4 = arith.constant 0 : index
    %2 = vector.load %arg3[%c0_3, %c0_4] : memref<1x32xf32, #tpu.memory_space<vmem>>, vector<1x32xf32>
    %3 = vector.extract_strided_slice %0 {offsets = [0, 0], sizes = [128, 1], strides = [1, 1]} : vector<128x2xf32> to vector<128x1xf32>
    %4 = vector.extract_strided_slice %1 {offsets = [0, 0], sizes = [1, 32], strides = [1, 1]} : vector<2x32xf32> to vector<1x32xf32>
    %5 = vector.broadcast %3 : vector<128x1xf32> to vector<128x32xf32>
    %6 = vector.broadcast %4 : vector<1x32xf32> to vector<128x32xf32>
    %7 = arith.mulf %5, %6 : vector<128x32xf32>
    %8 = vector.extract_strided_slice %0 {offsets = [0, 1], sizes = [128, 1], strides = [1, 1]} : vector<128x2xf32> to vector<128x1xf32>
    %9 = vector.extract_strided_slice %1 {offsets = [1, 0], sizes = [1, 32], strides = [1, 1]} : vector<2x32xf32> to vector<1x32xf32>
    %10 = vector.broadcast %8 : vector<128x1xf32> to vector<128x32xf32>
    %11 = vector.broadcast %9 : vector<1x32xf32> to vector<128x32xf32>
    %12 = arith.mulf %10, %11 : vector<128x32xf32>
    %13 = arith.addf %7, %12 : vector<128x32xf32>
    %14 = vector.broadcast %2 : vector<1x32xf32> to vector<128x32xf32>
    %15 = arith.addf %13, %14 : vector<128x32xf32>
    %c0_5 = arith.constant 0 : index
    %c0_6 = arith.constant 0 : index
    %16 = vector.load %arg4[%c0_5, %c0_6] : memref<128x32xf32, #tpu.memory_space<vmem>>, vector<128x32xf32>
    tpu.vector_store %arg4[%c0_5, %c0_6], %15 {strides = array<i32>} : memref<128x32xf32, #tpu.memory_space<vmem>>, vector<128x32xf32>,
    return
  }
  func.func @transform_0(%arg0: i32) -> (i32, i32) {
    %c0_i32 = arith.constant 0 : i32
    %c0_i32_0 = arith.constant 0 : i32
    return %arg0, %c0_i32 : i32, i32
  }
  func.func @transform_1(%arg0: i32) -> (i32, i32) {
    %c0_i32 = arith.constant 0 : i32
    %c0_i32_0 = arith.constant 0 : i32
    %c0_i32_1 = arith.constant 0 : i32
    return %c0_i32, %c0_i32_0 : i32, i32
  }
  func.func @transform_2(%arg0: i32) -> (i32, i32) {
    %c0_i32 = arith.constant 0 : i32
    %c0_i32_0 = arith.constant 0 : i32
    %c0_i32_1 = arith.constant 0 : i32
    return %c0_i32, %c0_i32_0 : i32, i32
  }
  func.func @transform_3(%arg0: i32) -> (i32, i32) {
    %c0_i32 = arith.constant 0 : i32
    %c0_i32_0 = arith.constant 0 : i32
    return %arg0, %c0_i32 : i32, i32
  }
}

</mosaic_0001>

<bundles_post_ra>
// kernel: tpu_custom_call.1
= control target key start
LH: loop header
LB: loop body
LE: loop exit
PB: predicated region body
PF: predicated region fallthrough
CT: control target
= control target key end

     0   :  { %v282_v0 = vmov 0   ;;  %v283_v17 = vmov 1   ;;  %v112_v28 = vlaneseq  ;;  %vm254_vm0 = vcmask 261120   ;;  %s500_s0 = inlined_call_operand.vmem [shape: f32[128,2], index: 0, kind: input, shape index: {}]   ;;  %s501_s1 = inlined_call_operand.vmem [shape: f32[2,32], index: 1, kind: input, shape index: {}]   ;;  %s502_s2 = inlined_call_operand.vmem [shape: f32[1,32], index: 2, kind: input, shape index: {}]   ;;  %s503_s3 = inlined_call_operand.vmem [shape: f32[128,32], index: 3, kind: output, shape index: {}]  }
   0x1   :  { %279 = vset.pattern.permute.xlu1 %v282_v0  ;;  %278 = vset.pattern.permute.xlu0 %v282_v0  ;;  %v16_v1 = vld [vmem:[%s500_s0 + $0x10] sm:$0xff]  ;;  %v14_v2 = vld [vmem:[%s500_s0] sm:$0xff]  ;;  %v17_v3 = vld [vmem:[%s500_s0 + $0x18] sm:$0xff] }
   0x2   :  { %44 = vperm.xlu1 %279, %v16_v1   ;;  %34 = vperm.xlu0 %278, %v14_v2   ;;  %v15_v4 = vld [vmem:[%s500_s0 + $0x8] sm:$0xff]  ;;  %v18_v6 = vld [vmem:[%s500_s0 + $0x20] sm:$0xff]  ;;  %v21_v7 = vld [vmem:[%s500_s0 + $0x38] sm:$0xff]  ;;  %v113_v31 = vshrl.u32 %v112_v28, 7 }
   0x3   :  { %v19_v5 = vld [vmem:[%s500_s0 + $0x28] sm:$0xff]  ;;  %v20_v8 = vld [vmem:[%s500_s0 + $0x30] sm:$0xff]  ;;  %v22_v10 = vld [vmem:[%s500_s0 + $0x40] sm:$0xff] }
   0x4   :  { %v23_v9 = vld [vmem:[%s500_s0 + $0x48] sm:$0xff]  ;;  %v25_v11 = vld [vmem:[%s500_s0 + $0x58] sm:$0xff]  ;;  %v24_v12 = vld [vmem:[%s500_s0 + $0x50] sm:$0xff]  ;;  %v114_v34 = vsub.s32 0, %v113_v31  ;;  %v198_v35 = vsub.s32 1, %v113_v31 }
   0x5   :  { %v27_v13 = vld [vmem:[%s500_s0 + $0x68] sm:$0xff]  ;;  %v26_v14 = vld [vmem:[%s500_s0 + $0x60] sm:$0xff]  ;;  %v29_v15 = vld [vmem:[%s500_s0 + $0x78] sm:$0xff] }
   0x6   :  { %49 = vperm.xlu1 %279, %v17_v3   ;;  %39 = vperm.xlu0 %278, %v15_v4   ;;  %v28_v16 = vld [vmem:[%s500_s0 + $0x70] sm:$0xff]  ;;  %v30_v36 = vld [vmem:[%s501_s1] sm:$0x3] }
   0x7   :  { %v371_v39 = vrot.slane %v30_v36, %v114_v34  ;;  %v373_v40 = vrot.slane %v30_v36, %v198_v35  ;;  %v382_v47 = vld [vmem:[%s502_s2] ss:$0 sm:$0xff] }
   0xa   :  { %59 = vperm.xlu1 %279, %v19_v5   ;;  %54 = vperm.xlu0 %278, %v18_v6  }
   0xe   :  { %69 = vperm.xlu1 %279, %v21_v7   ;;  %64 = vperm.xlu0 %278, %v20_v8  }
  0x12   :  { %79 = vperm.xlu1 %279, %v23_v9   ;;  %74 = vperm.xlu0 %278, %v22_v10  }
  0x16   :  { %89 = vperm.xlu1 %279, %v25_v11   ;;  %84 = vperm.xlu0 %278, %v24_v12  }
  0x1a   :  { %99 = vperm.xlu1 %279, %v27_v13   ;;  %94 = vperm.xlu0 %278, %v26_v14  }
  0x1e   :  { %109 = vperm.xlu1 %279, %v29_v15   ;;  %104 = vperm.xlu0 %278, %v28_v16  }
  0x22   :  { %281 = vset.pattern.permute.xlu1 %v283_v17  ;;  %280 = vset.pattern.permute.xlu0 %v283_v17 }
  0x23   :  { %137 = vperm.xlu1 %281, %v15_v4   ;;  %133 = vperm.xlu0 %280, %v14_v2  }
  0x27   :  { %141 = vperm.xlu1 %281, %v16_v1   ;;  %145 = vperm.xlu0 %280, %v17_v3  }
  0x2b   :  { %149 = vperm.xlu1 %281, %v18_v6   ;;  %153 = vperm.xlu0 %280, %v19_v5  }
  0x2f   :  { %157 = vperm.xlu1 %281, %v20_v8   ;;  %161 = vperm.xlu0 %280, %v21_v7  }
  0x33   :  { %165 = vperm.xlu1 %281, %v22_v10   ;;  %169 = vperm.xlu0 %280, %v23_v9  }
  0x37   :  { %173 = vperm.xlu1 %281, %v24_v12   ;;  %177 = vperm.xlu0 %280, %v25_v11  }
  0x3b   :  { %181 = vperm.xlu1 %281, %v26_v14   ;;  %185 = vperm.xlu0 %280, %v27_v13  }
  0x3f   :  { %189 = vperm.xlu1 %281, %v28_v16   ;;  %193 = vperm.xlu0 %280, %v29_v15  }
  0x81   :  { %v45_v18 = vpop.permute.xlu1 %44  ;;  %v35_v19 = vpop.permute.xlu0 %34 }
  0x82   :  { %v116_v43 = vmul.f32 %v371_v39, %v35_v19  ;;  %v118_v50 = vmul.f32 %v371_v39, %v45_v18 }
  0x85   :  { %v50_v20 = vpop.permute.xlu1 %49  ;;  %v40_v21 = vpop.permute.xlu0 %39 }
  0x86   :  { %v117_v44 = vmul.f32 %v371_v39, %v40_v21  ;;  %v119_v51 = vmul.f32 %v371_v39, %v50_v20 }
  0x89   :  { %v60_v22 = vpop.permute.xlu1 %59  ;;  %v55_v23 = vpop.permute.xlu0 %54 }
  0x8a   :  { %v121_v60 = vmul.f32 %v371_v39, %v60_v22  ;;  %v120_v61 = vmul.f32 %v371_v39, %v55_v23 }
  0x8d   :  { %v70_v24 = vpop.permute.xlu1 %69  ;;  %v65_v25 = vpop.permute.xlu0 %64 }
  0x8e   :  { %v123_v6 = vmul.f32 %v371_v39, %v70_v24  ;;  %v122_v7 = vmul.f32 %v371_v39, %v65_v25 }
  0x91   :  { %v352_v26 = vpop.permute.xlu1 %79  ;;  %v354_v27 = vpop.permute.xlu0 %74 }
  0x92   :  { %v125_v16 = vmul.f32 %v371_v39, %v352_v26  ;;  %v124_v17 = vmul.f32 %v371_v39, %v354_v27 }
  0x95   :  { %v356_v29 = vpop.permute.xlu1 %89  ;;  %v358_v30 = vpop.permute.xlu0 %84 }
  0x96   :  { %v127_v26 = vmul.f32 %v371_v39, %v356_v29  ;;  %v126_v27 = vmul.f32 %v371_v39, %v358_v30 }
  0x99   :  { %v360_v32 = vpop.permute.xlu1 %99  ;;  %v362_v33 = vpop.permute.xlu0 %94 }
  0x9d   :  { %v367_v37 = vpop.permute.xlu1 %109  ;;  %v369_v38 = vpop.permute.xlu0 %104 }
  0xa2   :  { %v138_v41 = vpop.permute.xlu1 %137  ;;  %v134_v42 = vpop.permute.xlu0 %133 }
  0xa3   :  { %v201_v45 = vmul.f32 %v373_v40, %v138_v41  ;;  %v200_v46 = vmul.f32 %v373_v40, %v134_v42  ;;  %v129_v42 = vmul.f32 %v371_v39, %v360_v32 }
  0xa5   :  { %v217_v48 = vadd.f32 %v201_v45, %v117_v44  ;;  %v216_v49 = vadd.f32 %v200_v46, %v116_v43  ;;  %v128_v43 = vmul.f32 %v371_v39, %v362_v33 }
  0xa6   :  { %v142_v52 = vpop.permute.xlu1 %141  ;;  %v146_v53 = vpop.permute.xlu0 %145 }
  0xa7   :  { %v239_v54 = vadd.f32 %v382_v47, %v217_v48  ;;  %v238_v55 = vadd.f32 %v382_v47, %v216_v49  ;;  %v202_v56 = vmul.f32 %v373_v40, %v142_v52  ;;  %v203_v57 = vmul.f32 %v373_v40, %v146_v53 }
  0xa8   :  { %v130_v52 = vmul.f32 %v371_v39, %v369_v38 }
  0xa9   :  { %256 = vst.msk [vmem:[%s503_s3 + $0x8] sm:$0xff] %vm254_vm0, %v239_v54  ;;  %255 = vst.msk [vmem:[%s503_s3] sm:$0xff] %vm254_vm0, %v238_v55  ;;  %v218_v58 = vadd.f32 %v202_v56, %v118_v50  ;;  %v219_v59 = vadd.f32 %v203_v57, %v119_v51  ;;  %v131_v51 = vmul.f32 %v371_v39, %v367_v37 }
  0xaa   :  { %v150_v62 = vpop.permute.xlu1 %149  ;;  %v154_v63 = vpop.permute.xlu0 %153 }
  0xab   :  { %v240_v0 = vadd.f32 %v382_v47, %v218_v58  ;;  %v241_v1 = vadd.f32 %v382_v47, %v219_v59  ;;  %v204_v2 = vmul.f32 %v373_v40, %v150_v62  ;;  %v205_v3 = vmul.f32 %v373_v40, %v154_v63 }
  0xad   :  { %257 = vst.msk [vmem:[%s503_s3 + $0x10] sm:$0xff] %vm254_vm0, %v240_v0  ;;  %258 = vst.msk [vmem:[%s503_s3 + $0x18] sm:$0xff] %vm254_vm0, %v241_v1  ;;  %v220_v4 = vadd.f32 %v204_v2, %v120_v61  ;;  %v221_v5 = vadd.f32 %v205_v3, %v121_v60 }
  0xae   :  { %v158_v8 = vpop.permute.xlu1 %157  ;;  %v162_v9 = vpop.permute.xlu0 %161 }
  0xaf   :  { %v242_v10 = vadd.f32 %v382_v47, %v220_v4  ;;  %v243_v11 = vadd.f32 %v382_v47, %v221_v5  ;;  %v206_v12 = vmul.f32 %v373_v40, %v158_v8  ;;  %v207_v13 = vmul.f32 %v373_v40, %v162_v9 }
  0xb1   :  { %259 = vst.msk [vmem:[%s503_s3 + $0x20] sm:$0xff] %vm254_vm0, %v242_v10  ;;  %260 = vst.msk [vmem:[%s503_s3 + $0x28] sm:$0xff] %vm254_vm0, %v243_v11  ;;  %v222_v14 = vadd.f32 %v206_v12, %v122_v7  ;;  %v223_v15 = vadd.f32 %v207_v13, %v123_v6 }
  0xb2   :  { %v166_v18 = vpop.permute.xlu1 %165  ;;  %v170_v19 = vpop.permute.xlu0 %169 }
  0xb3   :  { %v244_v20 = vadd.f32 %v382_v47, %v222_v14  ;;  %v245_v21 = vadd.f32 %v382_v47, %v223_v15  ;;  %v208_v22 = vmul.f32 %v373_v40, %v166_v18  ;;  %v209_v23 = vmul.f32 %v373_v40, %v170_v19 }
  0xb5   :  { %261 = vst.msk [vmem:[%s503_s3 + $0x30] sm:$0xff] %vm254_vm0, %v244_v20  ;;  %262 = vst.msk [vmem:[%s503_s3 + $0x38] sm:$0xff] %vm254_vm0, %v245_v21  ;;  %v224_v24 = vadd.f32 %v208_v22, %v124_v17  ;;  %v225_v25 = vadd.f32 %v209_v23, %v125_v16 }
  0xb6   :  { %v174_v28 = vpop.permute.xlu1 %173  ;;  %v178_v31 = vpop.permute.xlu0 %177 }
  0xb7   :  { %v246_v34 = vadd.f32 %v382_v47, %v224_v24  ;;  %v247_v35 = vadd.f32 %v382_v47, %v225_v25  ;;  %v210_v36 = vmul.f32 %v373_v40, %v174_v28  ;;  %v211_v41 = vmul.f32 %v373_v40, %v178_v31 }
  0xb9   :  { %263 = vst.msk [vmem:[%s503_s3 + $0x40] sm:$0xff] %vm254_vm0, %v246_v34  ;;  %264 = vst.msk [vmem:[%s503_s3 + $0x48] sm:$0xff] %vm254_vm0, %v247_v35  ;;  %v226_v29 = vadd.f32 %v210_v36, %v126_v27  ;;  %v227_v30 = vadd.f32 %v211_v41, %v127_v26 }
  0xba   :  { %v182_v44 = vpop.permute.xlu1 %181  ;;  %v186_v45 = vpop.permute.xlu0 %185 }
  0xbb   :  { %v248_v46 = vadd.f32 %v382_v47, %v226_v29  ;;  %v249_v48 = vadd.f32 %v382_v47, %v227_v30  ;;  %v212_v49 = vmul.f32 %v373_v40, %v182_v44  ;;  %v213_v50 = vmul.f32 %v373_v40, %v186_v45 }
  0xbd   :  { %265 = vst.msk [vmem:[%s503_s3 + $0x50] sm:$0xff] %vm254_vm0, %v248_v46  ;;  %266 = vst.msk [vmem:[%s503_s3 + $0x58] sm:$0xff] %vm254_vm0, %v249_v48  ;;  %v228_v32 = vadd.f32 %v212_v49, %v128_v43  ;;  %v229_v33 = vadd.f32 %v213_v50, %v129_v42 }
  0xbe   :  { %v190_v53 = vpop.permute.xlu1 %189  ;;  %v194_v54 = vpop.permute.xlu0 %193 }
  0xbf   :  { %v250_v55 = vadd.f32 %v382_v47, %v228_v32  ;;  %v251_v56 = vadd.f32 %v382_v47, %v229_v33  ;;  %v214_v57 = vmul.f32 %v373_v40, %v190_v53  ;;  %v215_v58 = vmul.f32 %v373_v40, %v194_v54 }
  0xc1   :  { %267 = vst.msk [vmem:[%s503_s3 + $0x60] sm:$0xff] %vm254_vm0, %v250_v55  ;;  %268 = vst.msk [vmem:[%s503_s3 + $0x68] sm:$0xff] %vm254_vm0, %v251_v56  ;;  %v230_v37 = vadd.f32 %v214_v57, %v130_v52  ;;  %v231_v38 = vadd.f32 %v215_v58, %v131_v51 }
  0xc3   :  { %v252_v39 = vadd.f32 %v382_v47, %v230_v37  ;;  %v253_v59 = vadd.f32 %v382_v47, %v231_v38 }
  0xc5   :  { %269 = vst.msk [vmem:[%s503_s3 + $0x70] sm:$0xff] %vm254_vm0, %v252_v39  ;;  %270 = vst.msk [vmem:[%s503_s3 + $0x78] sm:$0xff] %vm254_vm0, %v253_v59 }

</bundles_post_ra>
